<compile_context>
chip_gen: v6e
topology: v6e:2x2x1
jax: 0.10.0
libtpu: 0.0.40
codegen_flags: <defaults>
</compile_context>

<pallas_src>
import functools

import jax
import jax.numpy as jnp
import numpy as np
from jax.experimental import pallas as pl
from jax.experimental.pallas import tpu as pltpu


def _round_up(x, m):
    return ((x + m - 1) // m) * m


# ---------------------------------------------------------------------------
# Kernel 1: pairwise (negative squared) feature-space distance, row-tiled.
#   pdist[b, i, j] = 2 <x_i, x_j> - |x_i|^2 - |x_j|^2  == -|x_i - x_j|^2
# Row tiling keeps the (TMp, N) output block well under the scoped VMEM limit
# at realistic point-cloud N (feedback: v7x has only 64 MiB physical VMEM) and
# gives >1 grid step for pipelining / megacore sharding.
# ---------------------------------------------------------------------------
def _pdist_kernel(xr_ref, xa_ref, nr_ref, na_ref, o_ref):
    xr = xr_ref[0]                                   # (TMp, C) f32 row tile
    xa = xa_ref[0]                                   # (N,   C) f32 all points
    inner = jax.lax.dot_general(
        xr, xa, (((1,), (1,)), ((), ())),
        preferred_element_type=jnp.float32)          # (TMp, N)
    # squared norms are precomputed in the wrapper (lane-dense, no in-kernel
    # transpose / cross-lane reduction needed here)
    o_ref[0] = 2.0 * inner - nr_ref[0] - na_ref[0]


def pairwise_dist_pallas(x_t, block_rows=256):
    B, N, C = x_t.shape
    tmp = block_rows if (N >= block_rows and N % block_rows == 0) else N
    xx = jnp.sum(x_t * x_t, axis=-1)                 # (B, N)
    nr = xx[:, :, None]                              # (B, N, 1) row norms
    na = xx[:, None, :]                              # (B, 1, N) col norms
    return pl.pallas_call(
        _pdist_kernel,
        out_shape=jax.ShapeDtypeStruct((B, N, N), jnp.float32),
        grid_spec=pltpu.PrefetchScalarGridSpec(
            num_scalar_prefetch=0,
            grid=(B, N // tmp),
            in_specs=[
                pl.BlockSpec((1, tmp, C), lambda b, r: (b, r, 0)),
                pl.BlockSpec((1, N, C), lambda b, r: (b, 0, 0)),
                pl.BlockSpec((1, tmp, 1), lambda b, r: (b, r, 0)),
                pl.BlockSpec((1, 1, N), lambda b, r: (b, 0, 0)),
            ],
            out_specs=pl.BlockSpec((1, tmp, N), lambda b, r: (b, r, 0)),
        ),
        compiler_params=pltpu.CompilerParams(
            dimension_semantics=("parallel", "parallel")),
    )(x_t, x_t, nr, na)


# ---------------------------------------------------------------------------
# Kernel 2: edge features + conv_annular (+ folded BN + ReLU), row-tiled over
# B*N with bf16 MXU operands and f32 accumulation.
#   x_ref : (TM, C)      bf16
#   f_ref : (TM, k*C)    bf16  (k neighbour taps contiguous in lanes)
#   wx    : (C, C)       bf16  sum over the 3 taps of conv1's x-branch weight
#   we    : (3C, C)      bf16  conv1 edge-branch weight, 3 taps stacked on K
#   w2    : (wout1*C, C) bf16  conv2 weight, windows stacked on K
#   s*/t* : (1, C)       f32   folded eval-mode BN scale / shift
# ---------------------------------------------------------------------------
def _conv_kernel(x_ref, f_ref, wx_ref, we_ref, w2_ref,
                 s1_ref, t1_ref, s2_ref, t2_ref, o_ref, *, wout1, C, k):
    xb = x_ref[...]                                  # (TM, C) bf16
    s1 = s1_ref[...]
    t1 = t1_ref[...]
    s2 = s2_ref[...]
    t2 = t2_ref[...]

    # conv1 x-branch: identical for every annular window -> hoisted, one matmul
    hx = jnp.dot(xb, wx_ref[...], preferred_element_type=jnp.float32)  # (TM,C)

    # Edge features for all k taps at once (elementwise in f32, VPU-friendly),
    # then cast once to bf16 for the MXU.
    xf = xb.astype(jnp.float32)
    xk = jnp.concatenate([xf] * k, axis=-1)          # (TM, k*C)
    d = xk - f_ref[...].astype(jnp.float32)
    edge = (d - jnp.abs(d)).astype(jnp.bfloat16)     # x - f - |x - f|

    h1_parts = []
    for w in range(wout1):                           # static unroll, wout1 in {2,3}
        e_w = edge[:, w * 3 * C:(w + 1) * 3 * C]     # (TM, 3C) 128-aligned slice
        acc1 = hx + jnp.dot(e_w, we_ref[...],
                            preferred_element_type=jnp.float32)
        h1_parts.append(jnp.maximum(acc1 * s1 + t1, 0.0))   # BN + ReLU (layer 1)
    h1 = jnp.concatenate(h1_parts, axis=-1).astype(jnp.bfloat16)  # (TM, wout1*C)

    acc2 = jnp.dot(h1, w2_ref[...], preferred_element_type=jnp.float32)
    o_ref[...] = jnp.maximum(acc2 * s2 + t2, 0.0).astype(o_ref.dtype)


def conv_annular_pallas(x_bf, feat_bf, wx, we, w2c, s1, t1, s2, t2,
                        *, wout1, block_rows=256):
    M, C = x_bf.shape
    kC = feat_bf.shape[1]
    k = kC // C
    tm = min(block_rows, _round_up(M, 8))
    m_pad = _round_up(M, tm)
    if m_pad != M:
        x_bf = jnp.pad(x_bf, ((0, m_pad - M), (0, 0)))
        feat_bf = jnp.pad(feat_bf, ((0, m_pad - M), (0, 0)))

    kernel = functools.partial(_conv_kernel, wout1=wout1, C=C, k=k)
    out = pl.pallas_call(
        kernel,
        out_shape=jax.ShapeDtypeStruct((m_pad, C), jnp.float32),
        grid_spec=pltpu.PrefetchScalarGridSpec(
            num_scalar_prefetch=0,
            grid=(m_pad // tm,),
            in_specs=[
                pl.BlockSpec((tm, C), lambda r: (r, 0)),
                pl.BlockSpec((tm, kC), lambda r: (r, 0)),
                pl.BlockSpec((C, C), lambda r: (0, 0)),
                pl.BlockSpec((3 * C, C), lambda r: (0, 0)),
                pl.BlockSpec((wout1 * C, C), lambda r: (0, 0)),
                pl.BlockSpec((1, C), lambda r: (0, 0)),
                pl.BlockSpec((1, C), lambda r: (0, 0)),
                pl.BlockSpec((1, C), lambda r: (0, 0)),
                pl.BlockSpec((1, C), lambda r: (0, 0)),
            ],
            out_specs=pl.BlockSpec((tm, C), lambda r: (r, 0)),
        ),
        compiler_params=pltpu.CompilerParams(
            dimension_semantics=("parallel",)),
    )(x_bf, feat_bf, wx, we, w2c, s1, t1, s2, t2)
    return out[:M]


# ---------------------------------------------------------------------------
# Parameter construction (PyTorch-default-style shapes) and folding.
# ---------------------------------------------------------------------------
def init_params(key, in_channel, knn_num):
    assert knn_num in (6, 9)
    C = in_channel
    kw2 = 3 if knn_num == 9 else 2
    k1, k2, k3, k4 = jax.random.split(key, 4)
    b1w = 1.0 / np.sqrt(2 * C * 1 * 3)
    b2w = 1.0 / np.sqrt(C * 1 * kw2)
    return dict(
        W1=jax.random.uniform(k1, (C, 2 * C, 1, 3), jnp.float32, -b1w, b1w),
        b1=jax.random.uniform(k2, (C,), jnp.float32, -b1w, b1w),
        gamma1=jnp.ones((C,), jnp.float32),
        beta1=jnp.zeros((C,), jnp.float32),
        mean1=jnp.zeros((C,), jnp.float32),
        var1=jnp.ones((C,), jnp.float32),
        W2=jax.random.uniform(k3, (C, C, 1, kw2), jnp.float32, -b2w, b2w),
        b2=jax.random.uniform(k4, (C,), jnp.float32, -b2w, b2w),
        gamma2=jnp.ones((C,), jnp.float32),
        beta2=jnp.zeros((C,), jnp.float32),
        mean2=jnp.zeros((C,), jnp.float32),
        var2=jnp.ones((C,), jnp.float32),
    )


def fold_params(params, eps=1e-5):
    C = params["b1"].shape[0]
    # conv weight (O, I, 1, KW) -> (KW, I, O)
    w1m = jnp.transpose(params["W1"][:, :, 0, :], (2, 1, 0))   # (3, 2C, C)
    w2m = jnp.transpose(params["W2"][:, :, 0, :], (2, 1, 0))   # (kw2, C, C)
    wx = jnp.sum(w1m[:, :C, :], axis=0)                        # (C, C) hoisted x-branch
    we = w1m[:, C:, :].reshape(3 * C, C)                       # (3C, C) fused 3-tap edge
    w2c = w2m.reshape(-1, C)                                   # (kw2*C, C) fused conv2
    s1 = params["gamma1"] / jnp.sqrt(params["var1"] + eps)
    t1 = (params["b1"] - params["mean1"]) * s1 + params["beta1"]
    s2 = params["gamma2"] / jnp.sqrt(params["var2"] + eps)
    t2 = (params["b2"] - params["mean2"]) * s2 + params["beta2"]
    return (wx.astype(jnp.bfloat16), we.astype(jnp.bfloat16),
            w2c.astype(jnp.bfloat16),
            s1.reshape(1, C), t1.reshape(1, C),
            s2.reshape(1, C), t2.reshape(1, C))


# ---------------------------------------------------------------------------
# Full forward pass (Pallas kernels + JAX glue)
# ---------------------------------------------------------------------------
def dgcnn_block_forward(features, params, knn_num=9):
    assert knn_num in (6, 9)
    B, C, N, _ = features.shape
    x = features.reshape(B, C, N)
    x_t = jnp.transpose(x, (0, 2, 1))                      # (B, N, C) f32

    pdist = pairwise_dist_pallas(x_t)                      # (B, N, N) f32
    _, idx = jax.lax.top_k(pdist, knn_num)                 # (B, N, k)

    # neighbour gather (JAX glue), materialised directly in bf16
    x_bf_full = x_t.astype(jnp.bfloat16)
    feat = jax.vmap(lambda a, i: a[i])(x_bf_full, idx)     # (B, N, k, C) bf16

    x_flat = x_bf_full.reshape(B * N, C)                   # rows flattened: big M
    feat_flat = feat.reshape(B * N, knn_num * C)           # taps lane-contiguous

    wx, we, w2c, s1, t1, s2, t2 = fold_params(params)
    out_flat = conv_annular_pallas(x_flat, feat_flat, wx, we, w2c,
                                   s1, t1, s2, t2, wout1=knn_num // 3)
    out = out_flat.reshape(B, N, C)
    return jnp.transpose(out, (0, 2, 1))[..., None]        # (B, C, N, 1) NCHW


# ---------------------------------------------------------------------------
# Pure-JAX f32 reference (for numerical verification).  `idx` may be injected,
# mirroring get_SADgraph_feature(x, k, idx=None) in the PyTorch module.
# ---------------------------------------------------------------------------
def reference_forward(features, params, knn_num=9, idx=None, eps=1e-5):
    B, C, N, _ = features.shape
    x = features.reshape(B, C, N)
    xt = jnp.transpose(x, (0, 2, 1))
    if idx is None:
        inner = jnp.einsum("bnc,bmc->bnm", xt, xt)
        xx = jnp.sum(xt * xt, axis=-1)
        pdist = 2.0 * inner - xx[:, :, None] - xx[:, None, :]
        _, idx = jax.lax.top_k(pdist, knn_num)
    feat = jax.vmap(lambda a, i: a[i])(xt, idx)            # (B, N, k, C)
    xc = jnp.broadcast_to(xt[:, :, None, :], feat.shape)
    d = xc - feat
    gf = jnp.concatenate([xc, d - jnp.abs(d)], axis=-1)    # (B, N, k, 2C)
    gf = jnp.transpose(gf, (0, 3, 1, 2))                   # (B, 2C, N, k)

    def conv_bn_relu(y, W, b, gamma, beta, mean, var, stride_w):
        y = jax.lax.conv_general_dilated(
            y, W, (1, stride_w), "VALID",
            dimension_numbers=("NCHW", "OIHW", "NCHW"))
        y = y + b[None, :, None, None]
        y = (y - mean[None, :, None, None]) / jnp.sqrt(
            var[None, :, None, None] + eps)
        y = y * gamma[None, :, None, None] + beta[None, :, None, None]
        return jnp.maximum(y, 0.0)

    y = conv_bn_relu(gf, params["W1"], params["b1"], params["gamma1"],
                     params["beta1"], params["mean1"], params["var1"], 3)
    y = conv_bn_relu(y, params["W2"], params["b2"], params["gamma2"],
                     params["beta2"], params["mean2"], params["var2"], 1)
    return y


if __name__ == "__main__":
    B, C, N = 2, 128, 256      # batch, in_channel (module default 128), points
    KNN = 9

    key = jax.random.PRNGKey(0)
    kx, kp = jax.random.split(key)
    features = jax.random.normal(kx, (B, C, N, 1), dtype=jnp.float32)
    params = init_params(kp, in_channel=C, knn_num=KNN)

    # --- check 1: pdist kernel vs f32 reference (loose tol: matmul precision) ---
    x_t = jnp.transpose(features.reshape(B, C, N), (0, 2, 1))
    pd_k = jax.block_until_ready(pairwise_dist_pallas(x_t))
    inner = jnp.einsum("bnc,bmc->bnm", x_t, x_t)
    xx = jnp.sum(x_t * x_t, axis=-1)
    pd_r = 2.0 * inner - xx[:, :, None] - xx[:, None, :]
    np.testing.assert_allclose(np.asarray(pd_k), np.asarray(pd_r),
                               rtol=2e-2, atol=1.0)

    # --- check 2: full forward vs f32 reference (shared neighbour indices so
    #     tie-order in top_k cannot cause spurious mismatches; conv path runs
    #     with bf16 MXU operands, hence the loosened tolerance) ---
    out = jax.block_until_ready(dgcnn_block_forward(features, params, knn_num=KNN))
    _, idx = jax.lax.top_k(pd_k, KNN)
    ref = jax.block_until_ready(reference_forward(features, params, KNN, idx=idx))

    assert out.shape == (B, C, N, 1), out.shape
    np.testing.assert_allclose(np.asarray(out), np.asarray(ref),
                               rtol=5e-2, atol=5e-2)

    print("KERNEL_OK")
</pallas_src>

<mosaic_0001>
module attributes {stable_mosaic.version = 11 : i64} {
  func.func @_pdist_kernel(%arg0: i32, %arg1: i32, %arg2: memref<1x256x128xf32, #tpu.memory_space<vmem>>, %arg3: memref<1x256x128xf32, #tpu.memory_space<vmem>>, %arg4: memref<1x256x1xf32, #tpu.memory_space<vmem>>, %arg5: memref<1x1x256xf32, #tpu.memory_space<vmem>>, %arg6: memref<1x256x256xf32, #tpu.memory_space<vmem>>) attributes {dimension_semantics = [#tpu.dimension_semantics<parallel>, #tpu.dimension_semantics<parallel>], iteration_bounds = array<i64: 2, 1>, scalar_prefetch = 0 : i64, scratch_operands = 0 : i64, tpu.core_type = #tpu.core_type<tc>, window_params = [{transform_indices = @transform_0, window_bounds = array<i64: 1, 256, 128>}, {transform_indices = @transform_1, window_bounds = array<i64: 1, 256, 128>}, {transform_indices = @transform_2, window_bounds = array<i64: 1, 256, 1>}, {transform_indices = @transform_3, window_bounds = array<i64: 1, 1, 256>}, {transform_indices = @transform_4, window_bounds = array<i64: 1, 256, 256>}]} {
    %c0 = arith.constant 0 : index
    %c0_0 = arith.constant 0 : index
    %c0_1 = arith.constant 0 : index
    %0 = vector.load %arg2[%c0, %c0_0, %c0_1] : memref<1x256x128xf32, #tpu.memory_space<vmem>>, vector<1x256x128xf32>
    %1 = vector.shape_cast %0 : vector<1x256x128xf32> to vector<256x128xf32>
    %c0_2 = arith.constant 0 : index
    %c0_3 = arith.constant 0 : index
    %c0_4 = arith.constant 0 : index
    %2 = vector.load %arg3[%c0_2, %c0_3, %c0_4] : memref<1x256x128xf32, #tpu.memory_space<vmem>>, vector<1x256x128xf32>
    %3 = vector.shape_cast %2 : vector<1x256x128xf32> to vector<256x128xf32>
    %cst = arith.constant dense<0.000000e+00> : vector<256x256xf32>
    %4 = tpu.matmul %1, %3, %cst {dimension_numbers = #tpu.dot_dimension_numbers<[1], [1], [0], [0], [0, 0, 1, 0], [], []>} : vector<256x128xf32>, vector<256x128xf32>, vector<256x256xf32> -> vector<256x256xf32>
    %cst_5 = arith.constant 2.000000e+00 : f32
    %5 = vector.broadcast %cst_5 : f32 to vector<256x256xf32>
    %6 = arith.mulf %5, %4 : vector<256x256xf32>
    %c0_6 = arith.constant 0 : index
    %c0_7 = arith.constant 0 : index
    %c0_8 = arith.constant 0 : index
    %7 = vector.load %arg4[%c0_6, %c0_7, %c0_8] : memref<1x256x1xf32, #tpu.memory_space<vmem>>, vector<1x256x1xf32>
    %8 = vector.shape_cast %7 : vector<1x256x1xf32> to vector<256x1xf32>
    %9 = vector.broadcast %8 : vector<256x1xf32> to vector<256x256xf32>
    %10 = arith.subf %6, %9 : vector<256x256xf32>
    %c0_9 = arith.constant 0 : index
    %c0_10 = arith.constant 0 : index
    %c0_11 = arith.constant 0 : index
    %11 = vector.load %arg5[%c0_9, %c0_10, %c0_11] : memref<1x1x256xf32, #tpu.memory_space<vmem>>, vector<1x1x256xf32>
    %12 = vector.shape_cast %11 : vector<1x1x256xf32> to vector<1x256xf32>
    %13 = vector.broadcast %12 : vector<1x256xf32> to vector<256x256xf32>
    %14 = arith.subf %10, %13 : vector<256x256xf32>
    %c0_12 = arith.constant 0 : index
    %c0_13 = arith.constant 0 : index
    %c0_14 = arith.constant 0 : index
    %15 = vector.load %arg6[%c0_12, %c0_13, %c0_14] : memref<1x256x256xf32, #tpu.memory_space<vmem>>, vector<1x256x256xf32>
    %16 = vector.shape_cast %15 : vector<1x256x256xf32> to vector<256x256xf32>
    %17 = vector.shape_cast %14 : vector<256x256xf32> to vector<1x256x256xf32>
    tpu.vector_store %arg6[%c0_12, %c0_13, %c0_14], %17 {strides = array<i32>} : memref<1x256x256xf32, #tpu.memory_space<vmem>>, vector<1x256x256xf32>,
    return
  }
  func.func @transform_0(%arg0: i32, %arg1: i32) -> (i32, i32, i32) {
    %c0_i32 = arith.constant 0 : i32
    %c0_i32_0 = arith.constant 0 : i32
    return %arg0, %arg1, %c0_i32 : i32, i32, i32
  }
  func.func @transform_1(%arg0: i32, %arg1: i32) -> (i32, i32, i32) {
    %c0_i32 = arith.constant 0 : i32
    %c0_i32_0 = arith.constant 0 : i32
    %c0_i32_1 = arith.constant 0 : i32
    return %arg0, %c0_i32, %c0_i32_0 : i32, i32, i32
  }
  func.func @transform_2(%arg0: i32, %arg1: i32) -> (i32, i32, i32) {
    %c0_i32 = arith.constant 0 : i32
    %c0_i32_0 = arith.constant 0 : i32
    return %arg0, %arg1, %c0_i32 : i32, i32, i32
  }
  func.func @transform_3(%arg0: i32, %arg1: i32) -> (i32, i32, i32) {
    %c0_i32 = arith.constant 0 : i32
    %c0_i32_0 = arith.constant 0 : i32
    %c0_i32_1 = arith.constant 0 : i32
    return %arg0, %c0_i32, %c0_i32_0 : i32, i32, i32
  }
  func.func @transform_4(%arg0: i32, %arg1: i32) -> (i32, i32, i32) {
    %c0_i32 = arith.constant 0 : i32
    %c0_i32_0 = arith.constant 0 : i32
    return %arg0, %arg1, %c0_i32 : i32, i32, i32
  }
}

</mosaic_0001>

<bundles_post_ra>
// kernel: tpu_custom_call.1
= control target key start
LH: loop header
LB: loop body
LE: loop exit
PB: predicated region body
PF: predicated region fallthrough
CT: control target
= control target key end

     0   :  { %9 = vsyncpa [#allocation3], 0  ;;  %s2080_s0 = inlined_call_operand.vmem [shape: f32[2,256,128], index: 0, kind: input, shape index: {}]   ;;  %s2081_s1 = inlined_call_operand.hbm [shape: f32[2,256,128], index: 1, kind: input, shape index: {}]   ;;  %s2082_s2 = inlined_call_operand.vmem [shape: f32[2,256,1], index: 2, kind: input, shape index: {}]   ;;  %s2083_s3 = inlined_call_operand.vmem [shape: f32[2,1,256], index: 3, kind: input, shape index: {}]   ;;  %s2084_s4 = inlined_call_operand.hbm [shape: f32[2,256,256], index: 4, kind: output, shape index: {}]  }
   0x1   :  { %11 = vsyncpa [#allocation3 + $0x1], 0 }
   0x2   :  { %12 = vsyncpa [#allocation4], 0 }
   0x3   :  { %14 = vsyncpa [#allocation4 + $0x1], 0  ;;  %s1613_s15 = smov 0   ;;  %s1615_s16 = smov 0  }
   0x4   :  { %s1617_s17 = smov 0   ;;  %s1619_s18 = smov 0  }
   0x5   :  { %s1621_s19 = smov 0   ;;  %s1623_s20 = smov 0  }
   0x6 LB: > { %s1250_s21 = sadd.s32 4294967295, %s1579_s20   ;;  %s1251_s22 = sadd.s32 4294967294, %s1579_s20   ;;  %s1579_s20 = sphi %s1623_s20, %s20_s20   ;;  %s1575_s19 = sphi %s1621_s19, %s2095_s19   ;;  %s1571_s18 = sphi %s1619_s18, %s2094_s18   ;;  %s1567_s17 = sphi %s1617_s17, %s2093_s17   ;;  %s1563_s16 = sphi %s1615_s16, %s2092_s16   ;;  %s1559_s15 = sphi %s1613_s15, %s2091_s15  }
   0x7   : > { %s32_s23 = sadd.s32 1, %s1575_s19  ;;  %s67_s24 = sadd.s32 1, %s1567_s17 }
   0x8   : > { %p34_p0 = scmp.ge.s32.totalorder %s32_s23, 2  ;;  %p74_p1 = scmp.ne.s32.totalorder %s1567_s17, %s1563_s16 }
   0x9   : > { %p75_p2 = scmp.eq.s32.totalorder %s1579_s20, 0  ;;  %p80_p3 = scmp.ne.s32.totalorder %s1563_s16, %s1559_s15 }
   0xa   : > { %s2097_s23 = smov (%p34_p0, %s32_s23), 0  ;;  %p81_p5 = scmp.eq.s32.totalorder %s1250_s21, 0 }
   0xb   : > { %p1654_p4 = por %p75_p2, %p74_p1  ;;  %s64_s26 = ssub.s32 %s1575_s19, %s2097_s23 }
   0xc   : > { %p160_p6 = scmp.eq.s32.totalorder %s1250_s21, 1  ;;  %p65_p7 = scmp.eq.s32.totalorder %s64_s26, 0 }
   0xd   : > { %p1660_p8 = por %p81_p5, %p80_p3  ;;  %p166_p10 = scmp.eq.s32.totalorder %s1251_s22, 1 }
   0xe   : > { %p1664_p9 = por %p160_p6, %p74_p1  ;;  %p1414_p13 = scmp.lt.s32.totalorder %s1579_s20, 2 }
   0xf   : > { %s1669_s29 = scalar_select %p65_p7, %s1567_s17, %s67_s24  }
  0x10   : > { %p1671_p11 = por %p166_p10, %p80_p3  ;;  %s199_s5 = sand.u32 1, %s1567_s17  }
  0x11   : > { %s1254_s6 = sshll.u32 %s199_s5, 8  ;;  %s1270_s7 = sshll.u32 %s1575_s19, 12 }
  0x12   : > { %s209_s10 = scalar_lea.hbm %s2081_s1, %s1270_s7  ;;  %s203_s11 = scalar_lea.vmem [#allocation2], %s1254_s6 }
  0x13   : > { %s210_s12 = sshll.u32 %s203_s11, 4  ;;  %p1684_p0 = pnand %p1414_p13, %p1654_p4  ;;  %s211_s12 = int_to_ptr.vmem [resolvable:$true] %s210_s12 }
  0x14   : > { %p1257_p1 = scmp.ge.s32.totalorder %s1579_s20, 1  ;;  %s200_s14 = scalar_lea.sflag [#allocation3], %s199_s5 }
  0x15   : > { %p1473_p2 = pneg %p1684_p0  ;;  %s1484_s21 = scalar_lea.vmem %s211_s12, 4096 }
  0x16   : > { %p1485_p3 = scmp.ne.s32.totalorder %s211_s12, %s1484_s21  ;;  %s1581_s22 = smov [#allocation2]  }
  0x17   : > { %s1489_s24 = sshll.u32 %s1581_s22, 4  ;;  %s1490_s24 = int_to_ptr.vmem [resolvable:$false] %s1489_s24 }
  0x18   : > { %p1487_p5 = pnand %p1485_p3, %p1473_p2  ;;  %s1491_s26 = scalar_lea.vmem %s1490_s24, 8192 }
  0x19   : > { %p1492_p7 = scmp.lt.s32.totalorder %s211_s12, %s1490_s24  ;;  %p1493_p10 = scmp.lt.s32.totalorder %s1491_s26, %s1484_s21 }
  0x1a   : > { %p1488_p6 = pneg %p1487_p5 }
  0x1b   : > { %p1494_p12 = por %p1493_p10, %p1492_p7 }
  0x1d   : > { %p1495_p4 = pnand %p1494_p12, %p1488_p6 }
  0x1f   : > { %1498 = shalt.err (!%p1495_p4)
}
  0x20   : > { %s1582_s25 = smov 128   ;;  %s1583_s5 = smov 8  }
  0x21   : > { %1409 = dma.hbm_to_vmem [thread:$0]  (!%p1684_p0), %s209_s10, 4096, %s211_s12, %s200_s14, %s1582_s25, %s1582_s25, %s1583_s5  }
  0x22   : > { %p238_p13 = scmp.lt.s32.totalorder %s1579_s20, 3 }
  0x24   : > { %p239_p2 = pnand %p1257_p1, %p238_p13 }
  0x25   : > { %s1697_s6 = sand.u32 (!%p239_p2), 1, %s1563_s16  }
  0x26   : > { %242 = sbr.rel (%p239_p2) target bundleno = 385 (0x181), region = 36  ;;  %s1258_s7 = sshll.u32 (!%p239_p2), %s1697_s6, 8 }
  0x27   : > { %s245_s8 = scalar_lea.sflag (!%p239_p2), [#allocation3], %s1697_s6  ;;  %s1701_s9 = scalar_lea.vmem (!%p239_p2), [#allocation2], %s1258_s7 }
  0x2b   : > { %1550 = dma.done.wait (%p1660_p8), %s245_s8, 4096  }
  0x2c   : > { %1552 = vsyncadd (%p1660_p8), %s245_s8, 4294963200  ;;  %v1584_v0 = vmov 0   ;;  %p296_p12 = scmp.lt.s32.totalorder %s1571_s18, 1  ;;  %v383_v1 = vld [vmem:[%s1701_s9 + $0xf8] sm:$0xff]  ;;  %v382_v3 = vld [vmem:[%s1701_s9 + $0xf0] sm:$0xff]  ;;  %s1259_s7 = sshll.u32 %s1697_s6, 9 }
  0x2d   : > { %1470 = vset.pattern.permute.xlu1 %v1584_v0  ;;  %1469 = vset.pattern.permute.xlu0 %v1584_v0  ;;  %v367_v2 = vld [vmem:[%s1701_s9 + $0x78] sm:$0xff]  ;;  %v366_v4 = vld [vmem:[%s1701_s9 + $0x70] sm:$0xff]  ;;  %v381_v5 = vld [vmem:[%s1701_s9 + $0xe8] sm:$0xff]  ;;  %s1867_s8 = scalar_lea.vmem [#allocation5], %s1259_s7  ;;  %s1102_s12 = scalar_lea.sflag [#allocation4], %s1697_s6 }
  0x2e   : > { %s1712_s10 = scalar_select %p296_p12, %s1571_s18, 1  ;;  %1274 = vmatprep.subr.mxu0 %v383_v1  ;;  %1370 = vmatprep.subr.mxu1 %v383_v1  ;;  %v365_v6 = vld [vmem:[%s1701_s9 + $0x68] sm:$0xff]  ;;  %v380_v7 = vld [vmem:[%s1701_s9 + $0xe0] sm:$0xff]  ;;  %v379_v11 = vld [vmem:[%s1701_s9 + $0xd8] sm:$0xff] }
  0x2f   : > { %1275 = vmatpush3.xpose.msra.mxu0 %v367_v2  ;;  %1386 = vmatpush3.xpose.msra.mxu1 %v367_v2  ;;  %v364_v9 = vld [vmem:[%s1701_s9 + $0x60] sm:$0xff]  ;;  %v363_v14 = vld [vmem:[%s1701_s9 + $0x58] sm:$0xff]  ;;  %v378_v15 = vld [vmem:[%s1701_s9 + $0xd0] sm:$0xff]  ;;  %s1585_s14 = smov [#allocation5]  }
  0x30   : > { %1276 = vmatprep.subr.mxu0 %v382_v3  ;;  %1371 = vmatprep.subr.mxu1 %v382_v3  ;;  %s1271_s27 = sshll.u32 %s1712_s10, 8  ;;  %v362_v18 = vld [vmem:[%s1701_s9 + $0x50] sm:$0xff]  ;;  %v377_v19 = vld [vmem:[%s1701_s9 + $0xc8] sm:$0xff]  ;;  %v376_v23 = vld [vmem:[%s1701_s9 + $0xc0] sm:$0xff]  ;;  %s1264_s24 = sshll.u32 %s1712_s10, 1 }
  0x31   : > { %s1721_s13 = scalar_lea.vmem %s2080_s0, %s1271_s27  ;;  %s1730_s22 = scalar_lea.vmem %s2082_s2, %s1271_s27  ;;  %v361_v22 = vld [vmem:[%s1701_s9 + $0x48] sm:$0xff]  ;;  %v360_v26 = vld [vmem:[%s1701_s9 + $0x40] sm:$0xff]  ;;  %v375_v27 = vld [vmem:[%s1701_s9 + $0xb8] sm:$0xff] }
  0x32   : > { %v1725_v8 = vld [vmem:[%s1721_s13] sm:$0xff]  ;;  %v707_v12 = vld [vmem:[%s1730_s22 + $0x10] sm:$0xff]  ;;  %v708_v16 = vld [vmem:[%s1730_s22 + $0x18] sm:$0xff]  ;;  %s318_s5 = scalar_lea.vmem %s2083_s3, %s1264_s24  ;;  %s1118_s10 = sshll.u32 %s1867_s8, 4  ;;  %s2026_s10 = int_to_ptr.vmem [resolvable:$true] %s1118_s10 }
  0x33   : > { %1277 = vmatpush3.xpose.msra.mxu0 %v366_v4  ;;  %1387 = vmatpush3.xpose.msra.mxu1 %v366_v4  ;;  %v1734_v10 = vld [vmem:[%s1721_s13 + $0x80] sm:$0xff]  ;;  %v706_v17 = vld [vmem:[%s1730_s22 + $0x8] sm:$0xff]  ;;  %v712_v24 = vld [vmem:[%s1730_s22 + $0x38] sm:$0xff]  ;;  %s1503_s21 = sshll.u32 %s1585_s14, 4  ;;  %s1504_s21 = int_to_ptr.vmem [resolvable:$false] %s1503_s21 }
  0x34   : > { %1278 = vmatprep.subr.mxu0 %v381_v5  ;;  %1372 = vmatprep.subr.mxu1 %v381_v5  ;;  %v705_v13 = vld [vmem:[%s1730_s22] sm:$0xff]  ;;  %v710_v20 = vld [vmem:[%s1730_s22 + $0x28] sm:$0xff]  ;;  %v711_v25 = vld [vmem:[%s1730_s22 + $0x30] sm:$0xff]  ;;  %p1506_p3 = scmp.lt.s32.totalorder %s2026_s10, %s1504_s21 }
  0x35   : > { %1306 = vmatprep.mubr.f32.mxu0 %v1725_v8  ;;  %1338 = vmatprep.mubr.f32.mxu1 %v1734_v10  ;;  %v709_v21 = vld [vmem:[%s1730_s22 + $0x20] sm:$0xff]  ;;  %v714_v28 = vld [vmem:[%s1730_s22 + $0x48] sm:$0xff]  ;;  %v359_v30 = vld [vmem:[%s1701_s9 + $0x38] sm:$0xff] }
  0x36   : > { %749 = vperm.xlu1 %1470, %v707_v12   ;;  %739 = vperm.xlu0 %1469, %v705_v13   ;;  %v713_v29 = vld [vmem:[%s1730_s22 + $0x40] sm:$0xff]  ;;  %v374_v31 = vld [vmem:[%s1701_s9 + $0xb0] sm:$0xff]  ;;  %v716_v32 = vld [vmem:[%s1730_s22 + $0x58] sm:$0xff] }
  0x37   : > { %1279 = vmatpush3.xpose.msra.mxu0 %v365_v6  ;;  %1388 = vmatpush3.xpose.msra.mxu1 %v365_v6  ;;  %v715_v33 = vld [vmem:[%s1730_s22 + $0x50] sm:$0xff]  ;;  %v373_v35 = vld [vmem:[%s1701_s9 + $0xa8] sm:$0xff]  ;;  %v717_v37 = vld [vmem:[%s1730_s22 + $0x60] sm:$0xff] }
  0x38   : > { %1280 = vmatprep.subr.mxu0 %v380_v7  ;;  %1373 = vmatprep.subr.mxu1 %v380_v7  ;;  %v358_v34 = vld [vmem:[%s1701_s9 + $0x30] sm:$0xff]  ;;  %v718_v36 = vld [vmem:[%s1730_s22 + $0x68] sm:$0xff]  ;;  %v372_v39 = vld [vmem:[%s1701_s9 + $0xa0] sm:$0xff] }
  0x39   : > { %v357_v38 = vld [vmem:[%s1701_s9 + $0x28] sm:$0xff]  ;;  %v720_v40 = vld [vmem:[%s1730_s22 + $0x78] sm:$0xff]  ;;  %v719_v41 = vld [vmem:[%s1730_s22 + $0x70] sm:$0xff] }
  0x3a   : > { %754 = vperm.xlu1 %1470, %v708_v16   ;;  %744 = vperm.xlu0 %1469, %v706_v17   ;;  %v356_v42 = vld [vmem:[%s1701_s9 + $0x20] sm:$0xff]  ;;  %v371_v43 = vld [vmem:[%s1701_s9 + $0x98] sm:$0xff]  ;;  %v722_v44 = vld [vmem:[%s1730_s22 + $0x88] sm:$0xff] }
  0x3b   : > { %1281 = vmatpush3.xpose.msra.mxu0 %v364_v9  ;;  %1389 = vmatpush3.xpose.msra.mxu1 %v364_v9  ;;  %v721_v45 = vld [vmem:[%s1730_s22 + $0x80] sm:$0xff]  ;;  %v355_v46 = vld [vmem:[%s1701_s9 + $0x18] sm:$0xff]  ;;  %v370_v47 = vld [vmem:[%s1701_s9 + $0x90] sm:$0xff] }
  0x3c   : > { %1282 = vmatprep.subr.mxu0 %v379_v11  ;;  %1374 = vmatprep.subr.mxu1 %v379_v11  ;;  %v724_v48 = vld [vmem:[%s1730_s22 + $0x98] sm:$0xff]  ;;  %v723_v49 = vld [vmem:[%s1730_s22 + $0x90] sm:$0xff]  ;;  %v369_v51 = vld [vmem:[%s1701_s9 + $0x88] sm:$0xff] }
  0x3d   : > { %v354_v50 = vld [vmem:[%s1701_s9 + $0x10] sm:$0xff]  ;;  %v726_v52 = vld [vmem:[%s1730_s22 + $0xa8] sm:$0xff]  ;;  %v725_v53 = vld [vmem:[%s1730_s22 + $0xa0] sm:$0xff] }
  0x3e   : > { %764 = vperm.xlu1 %1470, %v710_v20   ;;  %759 = vperm.xlu0 %1469, %v709_v21   ;;  %v353_v54 = vld [vmem:[%s1701_s9 + $0x8] sm:$0xff]  ;;  %v368_v55 = vld [vmem:[%s1701_s9 + $0x80] sm:$0xff]  ;;  %v728_v56 = vld [vmem:[%s1730_s22 + $0xb8] sm:$0xff] }
  0x3f   : > { %1283 = vmatpush3.xpose.msra.mxu0 %v363_v14  ;;  %1390 = vmatpush3.xpose.msra.mxu1 %v363_v14  ;;  %v727_v57 = vld [vmem:[%s1730_s22 + $0xb0] sm:$0xff]  ;;  %v352_v58 = vld [vmem:[%s1701_s9] sm:$0xff]  ;;  %v730_v59 = vld [vmem:[%s1730_s22 + $0xc8] sm:$0xff]  ;;  %s1273_s9 = sshll.u32 %s1571_s18, 13 }
  0x40   : > { %1284 = vmatprep.subr.mxu0 %v378_v15  ;;  %1375 = vmatprep.subr.mxu1 %v378_v15  ;;  %v729_v60 = vld [vmem:[%s1730_s22 + $0xc0] sm:$0xff]  ;;  %v321_v61 = vld [vmem:[%s1721_s13 + $0x8] sm:$0xff]  ;;  %v732_v63 = vld [vmem:[%s1730_s22 + $0xd8] sm:$0xff]  ;;  %s2024_s11 = scalar_lea.hbm %s2084_s4, %s1273_s9 }
  0x41   : > { %v337_v62 = vld [vmem:[%s1721_s13 + $0x88] sm:$0xff]  ;;  %v731_v0 = vld [vmem:[%s1730_s22 + $0xd0] sm:$0xff]  ;;  %v733_v4 = vld [vmem:[%s1730_s22 + $0xe0] sm:$0xff] }
  0x42   : > { %774 = vperm.xlu1 %1470, %v712_v24   ;;  %769 = vperm.xlu0 %1469, %v711_v25   ;;  %v322_v1 = vld [vmem:[%s1721_s13 + $0x10] sm:$0xff]  ;;  %v734_v3 = vld [vmem:[%s1730_s22 + $0xe8] sm:$0xff]  ;;  %v323_v5 = vld [vmem:[%s1721_s13 + $0x18] sm:$0xff] }
  0x43   : > { %1285 = vmatpush3.xpose.msra.mxu0 %v362_v18  ;;  %1391 = vmatpush3.xpose.msra.mxu1 %v362_v18  ;;  %v338_v2 = vld [vmem:[%s1721_s13 + $0x90] sm:$0xff]  ;;  %v339_v6 = vld [vmem:[%s1721_s13 + $0x98] sm:$0xff]  ;;  %v324_v9 = vld [vmem:[%s1721_s13 + $0x20] sm:$0xff] }
  0x44   : > { %1286 = vmatprep.subr.mxu0 %v377_v19  ;;  %1376 = vmatprep.subr.mxu1 %v377_v19  ;;  %v736_v7 = vld [vmem:[%s1730_s22 + $0xf8] sm:$0xff]  ;;  %v325_v11 = vld [vmem:[%s1721_s13 + $0x28] sm:$0xff]  ;;  %v326_v13 = vld [vmem:[%s1721_s13 + $0x30] sm:$0xff] }
  0x45   : > { %v341_v12 = vld [vmem:[%s1721_s13 + $0xa8] sm:$0xff]  ;;  %v342_v14 = vld [vmem:[%s1721_s13 + $0xb0] sm:$0xff]  ;;  %v327_v15 = vld [vmem:[%s1721_s13 + $0x38] sm:$0xff] }
  0x46   : > { %784 = vperm.xlu1 %1470, %v714_v28   ;;  %779 = vperm.xlu0 %1469, %v713_v29   ;;  %v343_v16 = vld [vmem:[%s1721_s13 + $0xb8] sm:$0xff]  ;;  %v328_v17 = vld [vmem:[%s1721_s13 + $0x40] sm:$0xff]  ;;  %v329_v19 = vld [vmem:[%s1721_s13 + $0x48] sm:$0xff] }
  0x47   : > { %1287 = vmatpush3.xpose.msra.mxu0 %v361_v22  ;;  %1392 = vmatpush3.xpose.msra.mxu1 %v361_v22  ;;  %v344_v18 = vld [vmem:[%s1721_s13 + $0xc0] sm:$0xff]  ;;  %v345_v20 = vld [vmem:[%s1721_s13 + $0xc8] sm:$0xff]  ;;  %v330_v21 = vld [vmem:[%s1721_s13 + $0x50] sm:$0xff] }
  0x48   : > { %1288 = vmatprep.subr.mxu0 %v376_v23  ;;  %1377 = vmatprep.subr.mxu1 %v376_v23  ;;  %v346_v22 = vld [vmem:[%s1721_s13 + $0xd0] sm:$0xff]  ;;  %v331_v23 = vld [vmem:[%s1721_s13 + $0x58] sm:$0xff]  ;;  %v332_v25 = vld [vmem:[%s1721_s13 + $0x60] sm:$0xff] }
  0x49   : > { %v347_v24 = vld [vmem:[%s1721_s13 + $0xd8] sm:$0xff]  ;;  %v349_v28 = vld [vmem:[%s1721_s13 + $0xe8] sm:$0xff]  ;;  %v334_v29 = vld [vmem:[%s1721_s13 + $0x70] sm:$0xff] }
  0x4a   : > { %794 = vperm.xlu1 %1470, %v716_v32   ;;  %789 = vperm.xlu0 %1469, %v715_v33   ;;  %v351_v32 = vld [vmem:[%s1721_s13 + $0xf8] sm:$0xff] }
  0x4b   : > { %1289 = vmatpush3.xpose.msra.mxu0 %v360_v26  ;;  %1393 = vmatpush3.xpose.msra.mxu1 %v360_v26  ;;  %v348_v26 = vld [vmem:[%s1721_s13 + $0xe0] sm:$0xff] }
  0x4c   : > { %1290 = vmatprep.subr.mxu0 %v375_v27  ;;  %1378 = vmatprep.subr.mxu1 %v375_v27  ;;  %v333_v27 = vld [vmem:[%s1721_s13 + $0x68] sm:$0xff] }
  0x4e   : > { %804 = vperm.xlu1 %1470, %v718_v36   ;;  %799 = vperm.xlu0 %1469, %v717_v37  }
  0x4f   : > { %1291 = vmatpush3.xpose.msra.mxu0 %v359_v30  ;;  %1394 = vmatpush3.xpose.msra.mxu1 %v359_v30  ;;  %v350_v30 = vld [vmem:[%s1721_s13 + $0xf0] sm:$0xff] }
  0x50   : > { %1292 = vmatprep.subr.mxu0 %v374_v31  ;;  %1379 = vmatprep.subr.mxu1 %v374_v31  ;;  %v335_v31 = vld [vmem:[%s1721_s13 + $0x78] sm:$0xff] }
  0x52   : > { %814 = vperm.xlu1 %1470, %v720_v40   ;;  %809 = vperm.xlu0 %1469, %v719_v41  }
  0x53   : > { %1293 = vmatpush3.xpose.msra.mxu0 %v358_v34  ;;  %1395 = vmatpush3.xpose.msra.mxu1 %v358_v34 }
  0x54   : > { %1294 = vmatprep.subr.mxu0 %v373_v35  ;;  %1380 = vmatprep.subr.mxu1 %v373_v35 }
  0x56   : > { %824 = vperm.xlu1 %1470, %v722_v44   ;;  %819 = vperm.xlu0 %1469, %v721_v45   ;;  %v963_v44 = vlaneseq }
  0x57   : > { %1295 = vmatpush3.xpose.msra.mxu0 %v357_v38  ;;  %1396 = vmatpush3.xpose.msra.mxu1 %v357_v38 }
  0x58   : > { %1296 = vmatprep.subr.mxu0 %v372_v39  ;;  %1381 = vmatprep.subr.mxu1 %v372_v39 }
  0x5a   : > { %834 = vperm.xlu1 %1470, %v724_v48   ;;  %829 = vperm.xlu0 %1469, %v723_v49  }
  0x5b   : > { %1297 = vmatpush3.xpose.msra.mxu0 %v356_v42  ;;  %1397 = vmatpush3.xpose.msra.mxu1 %v356_v42 }
  0x5c   : > { %1298 = vmatprep.subr.mxu0 %v371_v43  ;;  %1382 = vmatprep.subr.mxu1 %v371_v43 }
  0x5e   : > { %844 = vperm.xlu1 %1470, %v726_v52   ;;  %839 = vperm.xlu0 %1469, %v725_v53  }
  0x5f   : > { %1299 = vmatpush3.xpose.msra.mxu0 %v355_v46  ;;  %1398 = vmatpush3.xpose.msra.mxu1 %v355_v46 }
  0x60   : > { %1300 = vmatprep.subr.mxu0 %v370_v47  ;;  %1383 = vmatprep.subr.mxu1 %v370_v47  ;;  %v964_v47 = vshrl.u32 %v963_v44, 7 }
  0x62   : > { %854 = vperm.xlu1 %1470, %v728_v56   ;;  %849 = vperm.xlu0 %1469, %v727_v57   ;;  %v969_v52 = vsub.s32 1, %v964_v47 }
  0x63   : > { %1301 = vmatpush3.xpose.msra.mxu0 %v354_v50  ;;  %1399 = vmatpush3.xpose.msra.mxu1 %v354_v50  ;;  %v965_v50 = vsub.s32 0, %v964_v47 }
  0x64   : > { %1302 = vmatprep.subr.mxu0 %v369_v51  ;;  %1384 = vmatprep.subr.mxu1 %v369_v51  ;;  %v961_v51 = vld [vmem:[%s318_s5] sm:$0x3] }
  0x66   : > { %864 = vperm.xlu1 %1470, %v730_v59   ;;  %859 = vperm.xlu0 %1469, %v729_v60   ;;  %v1863_v60 = vrot.slane %v961_v51, %v969_v52 }
  0x67   : > { %1303 = vmatpush3.xpose.msra.mxu0 %v353_v54  ;;  %1400 = vmatpush3.xpose.msra.mxu1 %v353_v54 }
  0x68   : > { %1304 = vmatprep.subr.mxu0 %v368_v55  ;;  %1385 = vmatprep.subr.mxu1 %v368_v55  ;;  %v1858_v55 = vrot.slane %v961_v51, %v965_v50 }
  0x6a   : > { %874 = vperm.xlu1 %1470, %v732_v63   ;;  %869 = vperm.xlu0 %1469, %v731_v0  }
  0x6b   : > { %1305 = vmatpush3.xpose.msra.mxu0 %v352_v58  ;;  %1401 = vmatpush3.xpose.msra.mxu1 %v352_v58 }
  0x6e   : > { %1307 = vmatmul.mubr.f32.vlgmr.msra.gmra.mxu0 %v1725_v8  ;;  %1339 = vmatmul.mubr.f32.vlgmr.msra.gmra.mxu1 %v1734_v10  ;;  %v735_v8 = vld [vmem:[%s1730_s22 + $0xf0] sm:$0xff]  ;;  %v340_v10 = vld [vmem:[%s1721_s13 + $0xa0] sm:$0xff]  ;;  %s1499_s13 = scalar_lea.vmem %s2026_s10, 8192  ;;  %s1505_s22 = scalar_lea.vmem %s1504_s21, 16384 }
  0x6f   : > { %1308 = vmatprep.mubr.f32.mxu0 %v321_v61  ;;  %1340 = vmatprep.mubr.f32.mxu1 %v337_v62  ;;  %p1500_p8 = scmp.ne.s32.totalorder %s2026_s10, %s1499_s13  ;;  %p1507_p5 = scmp.lt.s32.totalorder %s1505_s22, %s1499_s13 }
  0x70   : > { %884 = vperm.xlu1 %1470, %v734_v3   ;;  %879 = vperm.xlu0 %1469, %v733_v4  }
  0x71   : > { %p1501_p0 = pnand %p1500_p8, %p1664_p9  ;;  %p1508_p6 = por %p1507_p5, %p1506_p3 }
  0x72   : > { %1309 = vmatmul.mubr.f32.gmra.mxu0 %v321_v61  ;;  %1341 = vmatmul.mubr.f32.gmra.mxu1 %v337_v62 }
  0x73   : > { %1310 = vmatprep.mubr.f32.mxu0 %v322_v1  ;;  %1342 = vmatprep.mubr.f32.mxu1 %v338_v2  ;;  %p1502_p1 = pneg %p1501_p0 }
  0x74   : > { %894 = vperm.xlu1 %1470, %v736_v7   ;;  %889 = vperm.xlu0 %1469, %v735_v8  }
  0x75   : > { %p1509_p7 = pnand %p1508_p6, %p1502_p1 }
  0x76   : > { %1311 = vmatmul.mubr.f32.gmra.mxu0 %v322_v1  ;;  %1343 = vmatmul.mubr.f32.gmra.mxu1 %v338_v2 }
  0x77   : > { %1312 = vmatprep.mubr.f32.mxu0 %v323_v5  ;;  %1344 = vmatprep.mubr.f32.mxu1 %v339_v6 }
  0x7a   : > { %1313 = vmatmul.mubr.f32.gmra.mxu0 %v323_v5  ;;  %1345 = vmatmul.mubr.f32.gmra.mxu1 %v339_v6 }
  0x7b   : > { %1314 = vmatprep.mubr.f32.mxu0 %v324_v9  ;;  %1346 = vmatprep.mubr.f32.mxu1 %v340_v10 }
  0x7e   : > { %1315 = vmatmul.mubr.f32.gmra.mxu0 %v324_v9  ;;  %1347 = vmatmul.mubr.f32.gmra.mxu1 %v340_v10 }
  0x7f   : > { %1316 = vmatprep.mubr.f32.mxu0 %v325_v11  ;;  %1348 = vmatprep.mubr.f32.mxu1 %v341_v12 }
  0x82   : > { %1317 = vmatmul.mubr.f32.gmra.mxu0 %v325_v11  ;;  %1349 = vmatmul.mubr.f32.gmra.mxu1 %v341_v12 }
  0x83   : > { %1318 = vmatprep.mubr.f32.mxu0 %v326_v13  ;;  %1350 = vmatprep.mubr.f32.mxu1 %v342_v14 }
  0x86   : > { %1319 = vmatmul.mubr.f32.gmra.mxu0 %v326_v13  ;;  %1351 = vmatmul.mubr.f32.gmra.mxu1 %v342_v14 }
  0x87   : > { %1320 = vmatprep.mubr.f32.mxu0 %v327_v15  ;;  %1352 = vmatprep.mubr.f32.mxu1 %v343_v16 }
  0x8a   : > { %1321 = vmatmul.mubr.f32.gmra.mxu0 %v327_v15  ;;  %1353 = vmatmul.mubr.f32.gmra.mxu1 %v343_v16 }
  0x8b   : > { %1322 = vmatprep.mubr.f32.mxu0 %v328_v17  ;;  %1354 = vmatprep.mubr.f32.mxu1 %v344_v18 }
  0x8e   : > { %1323 = vmatmul.mubr.f32.gmra.mxu0 %v328_v17  ;;  %1355 = vmatmul.mubr.f32.gmra.mxu1 %v344_v18 }
  0x8f   : > { %1324 = vmatprep.mubr.f32.mxu0 %v329_v19  ;;  %1356 = vmatprep.mubr.f32.mxu1 %v345_v20 }
  0x92   : > { %1325 = vmatmul.mubr.f32.gmra.mxu0 %v329_v19  ;;  %1357 = vmatmul.mubr.f32.gmra.mxu1 %v345_v20 }
  0x93   : > { %1326 = vmatprep.mubr.f32.mxu0 %v330_v21  ;;  %1358 = vmatprep.mubr.f32.mxu1 %v346_v22 }
  0x96   : > { %1327 = vmatmul.mubr.f32.gmra.mxu0 %v330_v21  ;;  %1359 = vmatmul.mubr.f32.gmra.mxu1 %v346_v22 }
  0x97   : > { %1328 = vmatprep.mubr.f32.mxu0 %v331_v23  ;;  %1360 = vmatprep.mubr.f32.mxu1 %v347_v24 }
  0x9a   : > { %1329 = vmatmul.mubr.f32.gmra.mxu0 %v331_v23  ;;  %1361 = vmatmul.mubr.f32.gmra.mxu1 %v347_v24 }
  0x9b   : > { %1330 = vmatprep.mubr.f32.mxu0 %v332_v25  ;;  %1362 = vmatprep.mubr.f32.mxu1 %v348_v26 }
  0x9e   : > { %1331 = vmatmul.mubr.f32.gmra.mxu0 %v332_v25  ;;  %1363 = vmatmul.mubr.f32.gmra.mxu1 %v348_v26 }
  0x9f   : > { %1332 = vmatprep.mubr.f32.mxu0 %v333_v27  ;;  %1364 = vmatprep.mubr.f32.mxu1 %v349_v28 }
  0xa2   : > { %1333 = vmatmul.mubr.f32.gmra.mxu0 %v333_v27  ;;  %1365 = vmatmul.mubr.f32.gmra.mxu1 %v349_v28 }
  0xa3   : > { %1334 = vmatprep.mubr.f32.mxu0 %v334_v29  ;;  %1366 = vmatprep.mubr.f32.mxu1 %v350_v30 }
  0xa6   : > { %1335 = vmatmul.mubr.f32.gmra.mxu0 %v334_v29  ;;  %1367 = vmatmul.mubr.f32.gmra.mxu1 %v350_v30 }
  0xa7   : > { %1336 = vmatprep.mubr.f32.mxu0 %v335_v31  ;;  %1368 = vmatprep.mubr.f32.mxu1 %v351_v32 }
  0xaa   : > { %1337 = vmatmul.mubr.f32.gmra.mxu0 %v335_v31  ;;  %1369 = vmatmul.mubr.f32.gmra.mxu1 %v351_v32 }
  0xb1   : > { %v740_v33 = vpop.permute.xlu0 %739  ;;  %v1826_v34 = vpop.permute.xlu1 %749 }
  0xb5   : > { %v1828_v35 = vpop.permute.xlu0 %744  ;;  %v1830_v36 = vpop.permute.xlu1 %754 }
  0xb9   : > { %v1832_v37 = vpop.permute.xlu0 %759  ;;  %v1834_v38 = vpop.permute.xlu1 %764 }
  0xbd   : > { %v1836_v39 = vpop.permute.xlu0 %769  ;;  %v1838_v40 = vpop.permute.xlu1 %774 }
  0xc1   : > { %v1840_v41 = vpop.permute.xlu0 %779  ;;  %v1842_v42 = vpop.permute.xlu1 %784 }
  0xc5   : > { %v1844_v43 = vpop.permute.xlu0 %789  ;;  %v1846_v45 = vpop.permute.xlu1 %794 }
  0xc9   : > { %v1848_v46 = vpop.permute.xlu0 %799  ;;  %v1854_v48 = vpop.permute.xlu1 %804 }
  0xcd   : > { %v1856_v49 = vpop.permute.xlu0 %809  ;;  %v1860_v56 = vpop.permute.xlu1 %814 }
  0xd1   : > { %v820_v57 = vpop.permute.xlu0 %819  ;;  %v825_v13 = vpop.permute.xlu1 %824 }
  0xd5   : > { %v830_v22 = vpop.permute.xlu0 %829  ;;  %v835_v52 = vpop.permute.xlu1 %834 }
 0x12e   : > { %v450_v53 = vpop.f32.mrf.mxu0  ;;  %v546_v54 = vpop.f32.mrf.mxu1 }
 0x12f   : > { %v641_v58 = vmul.f32 2.0, %v450_v53  ;;  %v673_v59 = vmul.f32 2.0, %v546_v54 }
 0x130   : > { %v452_v61 = vpop.f32.mrf.mxu0  ;;  %v548_v62 = vpop.f32.mrf.mxu1 }
 0x131   : > { %v897_v63 = vsub.f32 %v641_v58, %v740_v33  ;;  %v929_v0 = vsub.f32 %v673_v59, %v820_v57  ;;  %v642_v1 = vmul.f32 2.0, %v452_v61  ;;  %v674_v2 = vmul.f32 2.0, %v548_v62 }
 0x132   : > { %v456_v3 = vpop.f32.mrf.mxu0  ;;  %v552_v4 = vpop.f32.mrf.mxu1 }
 0x133   : > { %v973_v5 = vsub.f32 %v897_v63, %v1858_v55  ;;  %v1005_v6 = vsub.f32 %v929_v0, %v1858_v55  ;;  %v898_v7 = vsub.f32 %v642_v1, %v740_v33  ;;  %v930_v8 = vsub.f32 %v674_v2, %v820_v57 }
 0x134   : > { %v643_v9 = vmul.f32 2.0, %v456_v3  ;;  %v675_v10 = vmul.f32 2.0, %v552_v4  ;;  %v458_v11 = vpop.f32.mrf.mxu0  ;;  %v554_v12 = vpop.f32.mrf.mxu1 }
 0x135   : > { %1037 = vst [vmem:[%s1867_s8] sm:$0xff] %v973_v5  ;;  %1069 = vst [vmem:[%s1867_s8 + $0x100] sm:$0xff] %v1005_v6  ;;  %v974_v14 = vsub.f32 %v898_v7, %v1863_v60  ;;  %v1006_v15 = vsub.f32 %v930_v8, %v1863_v60  ;;  %v644_v16 = vmul.f32 2.0, %v458_v11  ;;  %v676_v17 = vmul.f32 2.0, %v554_v12 }
 0x136   : > { %v899_v18 = vsub.f32 %v643_v9, %v1828_v35  ;;  %v931_v19 = vsub.f32 %v675_v10, %v825_v13  ;;  %v462_v20 = vpop.f32.mrf.mxu0  ;;  %v558_v21 = vpop.f32.mrf.mxu1 }
 0x137   : > { %1038 = vst [vmem:[%s1867_s8 + $0x8] sm:$0xff] %v974_v14  ;;  %1070 = vst [vmem:[%s1867_s8 + $0x108] sm:$0xff] %v1006_v15  ;;  %v900_v23 = vsub.f32 %v644_v16, %v1828_v35  ;;  %v932_v24 = vsub.f32 %v676_v17, %v825_v13  ;;  %v645_v25 = vmul.f32 2.0, %v462_v20  ;;  %v677_v26 = vmul.f32 2.0, %v558_v21  ;;  %v840_v15 = vpop.permute.xlu0 %839 }
 0x138   : > { %v975_v27 = vsub.f32 %v899_v18, %v1858_v55  ;;  %v1007_v28 = vsub.f32 %v931_v19, %v1858_v55  ;;  %v464_v29 = vpop.f32.mrf.mxu0  ;;  %v560_v30 = vpop.f32.mrf.mxu1 }
 0x139   : > { %v976_v31 = vsub.f32 %v900_v23, %v1863_v60  ;;  %v1008_v32 = vsub.f32 %v932_v24, %v1863_v60  ;;  %v901_v33 = vsub.f32 %v645_v25, %v1826_v34  ;;  %v933_v44 = vsub.f32 %v677_v26, %v830_v22  ;;  %v845_v23 = vpop.permute.xlu1 %844 }
 0x13a   : > { %1039 = vst [vmem:[%s1867_s8 + $0x10] sm:$0xff] %v975_v27  ;;  %1071 = vst [vmem:[%s1867_s8 + $0x110] sm:$0xff] %v1007_v28  ;;  %v646_v35 = vmul.f32 2.0, %v464_v29  ;;  %v678_v47 = vmul.f32 2.0, %v560_v30  ;;  %v468_v50 = vpop.f32.mrf.mxu0  ;;  %v564_v51 = vpop.f32.mrf.mxu1 }
 0x13b   : > { %1040 = vst [vmem:[%s1867_s8 + $0x18] sm:$0xff] %v976_v31  ;;  %1072 = vst [vmem:[%s1867_s8 + $0x118] sm:$0xff] %v1008_v32  ;;  %v977_v53 = vsub.f32 %v901_v33, %v1858_v55  ;;  %v1009_v54 = vsub.f32 %v933_v44, %v1858_v55  ;;  %v647_v57 = vmul.f32 2.0, %v468_v50  ;;  %v679_v58 = vmul.f32 2.0, %v564_v51 }
 0x13c   : > { %v902_v59 = vsub.f32 %v646_v35, %v1826_v34  ;;  %v934_v61 = vsub.f32 %v678_v47, %v830_v22  ;;  %v470_v62 = vpop.f32.mrf.mxu0  ;;  %v566_v63 = vpop.f32.mrf.mxu1 }
 0x13d   : > { %1041 = vst [vmem:[%s1867_s8 + $0x20] sm:$0xff] %v977_v53  ;;  %1073 = vst [vmem:[%s1867_s8 + $0x120] sm:$0xff] %v1009_v54  ;;  %v903_v0 = vsub.f32 %v647_v57, %v1830_v36  ;;  %v935_v1 = vsub.f32 %v679_v58, %v835_v52  ;;  %v648_v2 = vmul.f32 2.0, %v470_v62  ;;  %v680_v3 = vmul.f32 2.0, %v566_v63 }
 0x13e   : > { %v978_v4 = vsub.f32 %v902_v59, %v1863_v60  ;;  %v1010_v5 = vsub.f32 %v934_v61, %v1863_v60  ;;  %v474_v6 = vpop.f32.mrf.mxu0  ;;  %v570_v34 = vpop.f32.mrf.mxu1 }
 0x13f   : > { %v979_v7 = vsub.f32 %v903_v0, %v1858_v55  ;;  %v1011_v8 = vsub.f32 %v935_v1, %v1858_v55  ;;  %v904_v9 = vsub.f32 %v648_v2, %v1830_v36  ;;  %v936_v10 = vsub.f32 %v680_v3, %v835_v52  ;;  %v850_v52 = vpop.permute.xlu0 %849 }
 0x140   : > { %1042 = vst [vmem:[%s1867_s8 + $0x28] sm:$0xff] %v978_v4  ;;  %1074 = vst [vmem:[%s1867_s8 + $0x128] sm:$0xff] %v1010_v5  ;;  %v649_v11 = vmul.f32 2.0, %v474_v6  ;;  %v681_v12 = vmul.f32 2.0, %v570_v34  ;;  %v476_v13 = vpop.f32.mrf.mxu0  ;;  %v572_v14 = vpop.f32.mrf.mxu1 }
 0x141   : > { %1043 = vst [vmem:[%s1867_s8 + $0x30] sm:$0xff] %v979_v7  ;;  %1075 = vst [vmem:[%s1867_s8 + $0x130] sm:$0xff] %v1011_v8  ;;  %v980_v16 = vsub.f32 %v904_v9, %v1863_v60  ;;  %v1012_v17 = vsub.f32 %v936_v10, %v1863_v60  ;;  %v650_v18 = vmul.f32 2.0, %v476_v13  ;;  %v682_v19 = vmul.f32 2.0, %v572_v14  ;;  %v855_v14 = vpop.permute.xlu1 %854 }
 0x142   : > { %v905_v36 = vsub.f32 %v649_v11, %v1832_v37  ;;  %v937_v20 = vsub.f32 %v681_v12, %v840_v15  ;;  %v480_v21 = vpop.f32.mrf.mxu0  ;;  %v576_v22 = vpop.f32.mrf.mxu1 }
 0x143   : > { %1044 = vst [vmem:[%s1867_s8 + $0x38] sm:$0xff] %v980_v16  ;;  %1076 = vst [vmem:[%s1867_s8 + $0x138] sm:$0xff] %v1012_v17  ;;  %v906_v24 = vsub.f32 %v650_v18, %v1832_v37  ;;  %v938_v25 = vsub.f32 %v682_v19, %v840_v15  ;;  %v651_v26 = vmul.f32 2.0, %v480_v21  ;;  %v683_v27 = vmul.f32 2.0, %v576_v22  ;;  %v860_v21 = vpop.permute.xlu0 %859 }
 0x144   : > { %v981_v28 = vsub.f32 %v905_v36, %v1858_v55  ;;  %v1013_v29 = vsub.f32 %v937_v20, %v1858_v55  ;;  %v482_v30 = vpop.f32.mrf.mxu0  ;;  %v578_v31 = vpop.f32.mrf.mxu1 }
 0x145   : > { %v982_v32 = vsub.f32 %v906_v24, %v1863_v60  ;;  %v1014_v33 = vsub.f32 %v938_v25, %v1863_v60  ;;  %v907_v44 = vsub.f32 %v651_v26, %v1834_v38  ;;  %v939_v35 = vsub.f32 %v683_v27, %v845_v23 }
 0x146   : > { %1045 = vst [vmem:[%s1867_s8 + $0x40] sm:$0xff] %v981_v28  ;;  %1077 = vst [vmem:[%s1867_s8 + $0x140] sm:$0xff] %v1013_v29  ;;  %v652_v37 = vmul.f32 2.0, %v482_v30  ;;  %v684_v47 = vmul.f32 2.0, %v578_v31  ;;  %v486_v50 = vpop.f32.mrf.mxu0  ;;  %v582_v51 = vpop.f32.mrf.mxu1 }
 0x147   : > { %1046 = vst [vmem:[%s1867_s8 + $0x48] sm:$0xff] %v982_v32  ;;  %1078 = vst [vmem:[%s1867_s8 + $0x148] sm:$0xff] %v1014_v33  ;;  %v983_v53 = vsub.f32 %v907_v44, %v1858_v55  ;;  %v1015_v54 = vsub.f32 %v939_v35, %v1858_v55  ;;  %v653_v57 = vmul.f32 2.0, %v486_v50  ;;  %v685_v58 = vmul.f32 2.0, %v582_v51 }
 0x148   : > { %v908_v59 = vsub.f32 %v652_v37, %v1834_v38  ;;  %v940_v61 = vsub.f32 %v684_v47, %v845_v23  ;;  %v488_v62 = vpop.f32.mrf.mxu0  ;;  %v584_v63 = vpop.f32.mrf.mxu1 }
 0x149   : > { %1047 = vst [vmem:[%s1867_s8 + $0x50] sm:$0xff] %v983_v53  ;;  %1079 = vst [vmem:[%s1867_s8 + $0x150] sm:$0xff] %v1015_v54  ;;  %v909_v0 = vsub.f32 %v653_v57, %v1836_v39  ;;  %v941_v1 = vsub.f32 %v685_v58, %v850_v52  ;;  %v654_v2 = vmul.f32 2.0, %v488_v62  ;;  %v686_v3 = vmul.f32 2.0, %v584_v63  ;;  %v865_v47 = vpop.permute.xlu1 %864 }
 0x14a   : > { %v984_v4 = vsub.f32 %v908_v59, %v1863_v60  ;;  %v1016_v5 = vsub.f32 %v940_v61, %v1863_v60  ;;  %v492_v6 = vpop.f32.mrf.mxu0  ;;  %v588_v38 = vpop.f32.mrf.mxu1 }
 0x14b   : > { %v985_v34 = vsub.f32 %v909_v0, %v1858_v55  ;;  %v1017_v7 = vsub.f32 %v941_v1, %v1858_v55  ;;  %v910_v8 = vsub.f32 %v654_v2, %v1836_v39  ;;  %v942_v9 = vsub.f32 %v686_v3, %v850_v52 }
 0x14c   : > { %1048 = vst [vmem:[%s1867_s8 + $0x58] sm:$0xff] %v984_v4  ;;  %1080 = vst [vmem:[%s1867_s8 + $0x158] sm:$0xff] %v1016_v5  ;;  %v655_v10 = vmul.f32 2.0, %v492_v6  ;;  %v687_v11 = vmul.f32 2.0, %v588_v38  ;;  %v494_v12 = vpop.f32.mrf.mxu0  ;;  %v590_v13 = vpop.f32.mrf.mxu1 }
 0x14d   : > { %1049 = vst [vmem:[%s1867_s8 + $0x60] sm:$0xff] %v985_v34  ;;  %1081 = vst [vmem:[%s1867_s8 + $0x160] sm:$0xff] %v1017_v7  ;;  %v986_v15 = vsub.f32 %v910_v8, %v1863_v60  ;;  %v1018_v16 = vsub.f32 %v942_v9, %v1863_v60  ;;  %v656_v17 = vmul.f32 2.0, %v494_v12  ;;  %v688_v18 = vmul.f32 2.0, %v590_v13 }
 0x14e   : > { %v911_v39 = vsub.f32 %v655_v10, %v1838_v40  ;;  %v943_v19 = vsub.f32 %v687_v11, %v855_v14  ;;  %v498_v36 = vpop.f32.mrf.mxu0  ;;  %v594_v20 = vpop.f32.mrf.mxu1 }
 0x14f   : > { %1050 = vst [vmem:[%s1867_s8 + $0x68] sm:$0xff] %v986_v15  ;;  %1082 = vst [vmem:[%s1867_s8 + $0x168] sm:$0xff] %v1018_v16  ;;  %v912_v22 = vsub.f32 %v656_v17, %v1838_v40  ;;  %v944_v23 = vsub.f32 %v688_v18, %v855_v14  ;;  %v657_v24 = vmul.f32 2.0, %v498_v36  ;;  %v689_v25 = vmul.f32 2.0, %v594_v20  ;;  %v870_v10 = vpop.permute.xlu0 %869  ;;  %v875_v18 = vpop.permute.xlu1 %874 }
 0x150   : > { %v987_v26 = vsub.f32 %v911_v39, %v1858_v55  ;;  %v1019_v27 = vsub.f32 %v943_v19, %v1858_v55  ;;  %v500_v28 = vpop.f32.mrf.mxu0  ;;  %v596_v29 = vpop.f32.mrf.mxu1 }
 0x151   : > { %v988_v30 = vsub.f32 %v912_v22, %v1863_v60  ;;  %v1020_v31 = vsub.f32 %v944_v23, %v1863_v60  ;;  %v913_v32 = vsub.f32 %v657_v24, %v1840_v41  ;;  %v945_v33 = vsub.f32 %v689_v25, %v860_v21 }
 0x152   : > { %1051 = vst [vmem:[%s1867_s8 + $0x70] sm:$0xff] %v987_v26  ;;  %1083 = vst [vmem:[%s1867_s8 + $0x170] sm:$0xff] %v1019_v27  ;;  %v658_v40 = vmul.f32 2.0, %v500_v28  ;;  %v690_v44 = vmul.f32 2.0, %v596_v29  ;;  %v504_v35 = vpop.f32.mrf.mxu0  ;;  %v600_v37 = vpop.f32.mrf.mxu1 }
 0x153   : > { %1052 = vst [vmem:[%s1867_s8 + $0x78] sm:$0xff] %v988_v30  ;;  %1084 = vst [vmem:[%s1867_s8 + $0x178] sm:$0xff] %v1020_v31  ;;  %v989_v50 = vsub.f32 %v913_v32, %v1858_v55  ;;  %v1021_v51 = vsub.f32 %v945_v33, %v1858_v55  ;;  %v659_v52 = vmul.f32 2.0, %v504_v35  ;;  %v691_v53 = vmul.f32 2.0, %v600_v37  ;;  %v880_v32 = vpop.permute.xlu0 %879 }
 0x154   : > { %v914_v54 = vsub.f32 %v658_v40, %v1840_v41  ;;  %v946_v57 = vsub.f32 %v690_v44, %v860_v21  ;;  %v506_v58 = vpop.f32.mrf.mxu0  ;;  %v602_v59 = vpop.f32.mrf.mxu1 }
 0x155   : > { %1053 = vst [vmem:[%s1867_s8 + $0x80] sm:$0xff] %v989_v50  ;;  %1085 = vst [vmem:[%s1867_s8 + $0x180] sm:$0xff] %v1021_v51  ;;  %v915_v61 = vsub.f32 %v659_v52, %v1842_v42  ;;  %v947_v62 = vsub.f32 %v691_v53, %v865_v47  ;;  %v660_v63 = vmul.f32 2.0, %v506_v58  ;;  %v692_v0 = vmul.f32 2.0, %v602_v59 }
 0x156   : > { %v990_v1 = vsub.f32 %v914_v54, %v1863_v60  ;;  %v1022_v2 = vsub.f32 %v946_v57, %v1863_v60  ;;  %v510_v3 = vpop.f32.mrf.mxu0  ;;  %v606_v41 = vpop.f32.mrf.mxu1 }
 0x157   : > { %v991_v4 = vsub.f32 %v915_v61, %v1858_v55  ;;  %v1023_v5 = vsub.f32 %v947_v62, %v1858_v55  ;;  %v916_v6 = vsub.f32 %v660_v63, %v1842_v42  ;;  %v948_v38 = vsub.f32 %v692_v0, %v865_v47 }
 0x158   : > { %1054 = vst [vmem:[%s1867_s8 + $0x88] sm:$0xff] %v990_v1  ;;  %1086 = vst [vmem:[%s1867_s8 + $0x188] sm:$0xff] %v1022_v2  ;;  %v661_v34 = vmul.f32 2.0, %v510_v3  ;;  %v693_v7 = vmul.f32 2.0, %v606_v41  ;;  %v512_v8 = vpop.f32.mrf.mxu0  ;;  %v608_v9 = vpop.f32.mrf.mxu1 }
 0x159   : > { %1055 = vst [vmem:[%s1867_s8 + $0x90] sm:$0xff] %v991_v4  ;;  %1087 = vst [vmem:[%s1867_s8 + $0x190] sm:$0xff] %v1023_v5  ;;  %v992_v11 = vsub.f32 %v916_v6, %v1863_v60  ;;  %v1024_v12 = vsub.f32 %v948_v38, %v1863_v60  ;;  %v662_v13 = vmul.f32 2.0, %v512_v8  ;;  %v694_v14 = vmul.f32 2.0, %v608_v9  ;;  %v885_v5 = vpop.permute.xlu1 %884 }
 0x15a   : > { %v917_v42 = vsub.f32 %v661_v34, %v1844_v43  ;;  %v949_v15 = vsub.f32 %v693_v7, %v870_v10  ;;  %v516_v16 = vpop.f32.mrf.mxu0  ;;  %v612_v17 = vpop.f32.mrf.mxu1 }
 0x15b   : > { %1056 = vst [vmem:[%s1867_s8 + $0x98] sm:$0xff] %v992_v11  ;;  %1088 = vst [vmem:[%s1867_s8 + $0x198] sm:$0xff] %v1024_v12  ;;  %v918_v39 = vsub.f32 %v662_v13, %v1844_v43  ;;  %v950_v19 = vsub.f32 %v694_v14, %v870_v10  ;;  %v663_v36 = vmul.f32 2.0, %v516_v16  ;;  %v695_v20 = vmul.f32 2.0, %v612_v17  ;;  %v890_v11 = vpop.permute.xlu0 %889 }
 0x15c   : > { %v993_v21 = vsub.f32 %v917_v42, %v1858_v55  ;;  %v1025_v22 = vsub.f32 %v949_v15, %v1858_v55  ;;  %v518_v23 = vpop.f32.mrf.mxu0  ;;  %v614_v24 = vpop.f32.mrf.mxu1 }
 0x15d   : > { %v994_v25 = vsub.f32 %v918_v39, %v1863_v60  ;;  %v1026_v26 = vsub.f32 %v950_v19, %v1863_v60  ;;  %v919_v27 = vsub.f32 %v663_v36, %v1846_v45  ;;  %v951_v28 = vsub.f32 %v695_v20, %v875_v18 }
 0x15e   : > { %1057 = vst [vmem:[%s1867_s8 + $0xa0] sm:$0xff] %v993_v21  ;;  %1089 = vst [vmem:[%s1867_s8 + $0x1a0] sm:$0xff] %v1025_v22  ;;  %v664_v43 = vmul.f32 2.0, %v518_v23  ;;  %v696_v29 = vmul.f32 2.0, %v614_v24  ;;  %v522_v30 = vpop.f32.mrf.mxu0  ;;  %v618_v31 = vpop.f32.mrf.mxu1 }
 0x15f   : > { %1058 = vst [vmem:[%s1867_s8 + $0xa8] sm:$0xff] %v994_v25  ;;  %1090 = vst [vmem:[%s1867_s8 + $0x1a8] sm:$0xff] %v1026_v26  ;;  %v995_v33 = vsub.f32 %v919_v27, %v1858_v55  ;;  %v1027_v40 = vsub.f32 %v951_v28, %v1858_v55  ;;  %v665_v44 = vmul.f32 2.0, %v522_v30  ;;  %v697_v35 = vmul.f32 2.0, %v618_v31  ;;  %v895_v24 = vpop.permute.xlu1 %894 }
 0x160   : > { %v920_v37 = vsub.f32 %v664_v43, %v1846_v45  ;;  %v952_v47 = vsub.f32 %v696_v29, %v875_v18  ;;  %v524_v50 = vpop.f32.mrf.mxu0  ;;  %v620_v51 = vpop.f32.mrf.mxu1 }
 0x161   : > { %1059 = vst [vmem:[%s1867_s8 + $0xb0] sm:$0xff] %v995_v33  ;;  %1091 = vst [vmem:[%s1867_s8 + $0x1b0] sm:$0xff] %v1027_v40  ;;  %v921_v52 = vsub.f32 %v665_v44, %v1848_v46  ;;  %v953_v53 = vsub.f32 %v697_v35, %v880_v32  ;;  %v666_v54 = vmul.f32 2.0, %v524_v50  ;;  %v698_v57 = vmul.f32 2.0, %v620_v51 }
 0x162   : > { %v996_v58 = vsub.f32 %v920_v37, %v1863_v60  ;;  %v1028_v59 = vsub.f32 %v952_v47, %v1863_v60  ;;  %v528_v61 = vpop.f32.mrf.mxu0  ;;  %v624_v45 = vpop.f32.mrf.mxu1 }
 0x163   : > { %v997_v62 = vsub.f32 %v921_v52, %v1858_v55  ;;  %v1029_v63 = vsub.f32 %v953_v53, %v1858_v55  ;;  %v922_v0 = vsub.f32 %v666_v54, %v1848_v46  ;;  %v954_v1 = vsub.f32 %v698_v57, %v880_v32 }
 0x164   : > { %1060 = vst [vmem:[%s1867_s8 + $0xb8] sm:$0xff] %v996_v58  ;;  %1092 = vst [vmem:[%s1867_s8 + $0x1b8] sm:$0xff] %v1028_v59  ;;  %v667_v2 = vmul.f32 2.0, %v528_v61  ;;  %v699_v3 = vmul.f32 2.0, %v624_v45  ;;  %v530_v41 = vpop.f32.mrf.mxu0  ;;  %v626_v4 = vpop.f32.mrf.mxu1 }
 0x165   : > { %1061 = vst [vmem:[%s1867_s8 + $0xc0] sm:$0xff] %v997_v62  ;;  %1093 = vst [vmem:[%s1867_s8 + $0x1c0] sm:$0xff] %v1029_v63  ;;  %v998_v6 = vsub.f32 %v922_v0, %v1863_v60  ;;  %v1030_v38 = vsub.f32 %v954_v1, %v1863_v60  ;;  %v668_v34 = vmul.f32 2.0, %v530_v41  ;;  %v700_v7 = vmul.f32 2.0, %v626_v4 }
 0x166   : > { %v923_v46 = vsub.f32 %v667_v2, %v1854_v48  ;;  %v955_v8 = vsub.f32 %v699_v3, %v885_v5  ;;  %v534_v9 = vpop.f32.mrf.mxu0  ;;  %v630_v10 = vpop.f32.mrf.mxu1 }
 0x167   : > { %1062 = vst [vmem:[%s1867_s8 + $0xc8] sm:$0xff] %v998_v6  ;;  %1094 = vst [vmem:[%s1867_s8 + $0x1c8] sm:$0xff] %v1030_v38  ;;  %v924_v12 = vsub.f32 %v668_v34, %v1854_v48  ;;  %v956_v13 = vsub.f32 %v700_v7, %v885_v5  ;;  %v669_v14 = vmul.f32 2.0, %v534_v9  ;;  %v701_v42 = vmul.f32 2.0, %v630_v10 }
 0x168   : > { %v999_v15 = vsub.f32 %v923_v46, %v1858_v55  ;;  %v1031_v16 = vsub.f32 %v955_v8, %v1858_v55  ;;  %v536_v17 = vpop.f32.mrf.mxu0  ;;  %v632_v18 = vpop.f32.mrf.mxu1 }
 0x169   : > { %v1000_v39 = vsub.f32 %v924_v12, %v1863_v60  ;;  %v1032_v19 = vsub.f32 %v956_v13, %v1863_v60  ;;  %v925_v36 = vsub.f32 %v669_v14, %v1856_v49  ;;  %v957_v20 = vsub.f32 %v701_v42, %v890_v11 }
 0x16a   : > { %1063 = vst [vmem:[%s1867_s8 + $0xd0] sm:$0xff] %v999_v15  ;;  %1095 = vst [vmem:[%s1867_s8 + $0x1d0] sm:$0xff] %v1031_v16  ;;  %v670_v48 = vmul.f32 2.0, %v536_v17  ;;  %v702_v21 = vmul.f32 2.0, %v632_v18  ;;  %v540_v22 = vpop.f32.mrf.mxu0  ;;  %v636_v23 = vpop.f32.mrf.mxu1 }
 0x16b   : > { %1064 = vst [vmem:[%s1867_s8 + $0xd8] sm:$0xff] %v1000_v39  ;;  %1096 = vst [vmem:[%s1867_s8 + $0x1d8] sm:$0xff] %v1032_v19  ;;  %v1001_v25 = vsub.f32 %v925_v36, %v1858_v55  ;;  %v1033_v26 = vsub.f32 %v957_v20, %v1858_v55  ;;  %v671_v27 = vmul.f32 2.0, %v540_v22  ;;  %v703_v28 = vmul.f32 2.0, %v636_v23 }
 0x16c   : > { %v926_v43 = vsub.f32 %v670_v48, %v1856_v49  ;;  %v958_v29 = vsub.f32 %v702_v21, %v890_v11  ;;  %v542_v30 = vpop.f32.mrf.mxu0  ;;  %v638_v31 = vpop.f32.mrf.mxu1 }
 0x16d   : > { %1065 = vst [vmem:[%s1867_s8 + $0xe0] sm:$0xff] %v1001_v25  ;;  %1097 = vst [vmem:[%s1867_s8 + $0x1e0] sm:$0xff] %v1033_v26  ;;  %v927_v32 = vsub.f32 %v671_v27, %v1860_v56  ;;  %v959_v33 = vsub.f32 %v703_v28, %v895_v24  ;;  %v672_v40 = vmul.f32 2.0, %v542_v30  ;;  %v704_v44 = vmul.f32 2.0, %v638_v31 }
 0x16e   : > { %v1002_v49 = vsub.f32 %v926_v43, %v1863_v60  ;;  %v1034_v35 = vsub.f32 %v958_v29, %v1863_v60 }
 0x16f   : > { %v1003_v37 = vsub.f32 %v927_v32, %v1858_v55  ;;  %v1035_v47 = vsub.f32 %v959_v33, %v1858_v55  ;;  %v928_v50 = vsub.f32 %v672_v40, %v1860_v56  ;;  %v960_v51 = vsub.f32 %v704_v44, %v895_v24 }
 0x170   : > { %1066 = vst [vmem:[%s1867_s8 + $0xe8] sm:$0xff] %v1002_v49  ;;  %1098 = vst [vmem:[%s1867_s8 + $0x1e8] sm:$0xff] %v1034_v35 }
 0x171   : > { %1067 = vst [vmem:[%s1867_s8 + $0xf0] sm:$0xff] %v1003_v37  ;;  %1099 = vst [vmem:[%s1867_s8 + $0x1f0] sm:$0xff] %v1035_v47  ;;  %v1004_v55 = vsub.f32 %v928_v50, %v1863_v60  ;;  %v1036_v52 = vsub.f32 %v960_v51, %v1863_v60 }
 0x173   : > { %1068 = vst [vmem:[%s1867_s8 + $0xf8] sm:$0xff] %v1004_v55  ;;  %1100 = vst [vmem:[%s1867_s8 + $0x1f8] sm:$0xff] %v1036_v52 }
 0x174   : > { %1512 = shalt.err (!%p1509_p7)
}
 0x175   : > { %s1513_s24 = scalar_lea.hbm %s2024_s11, 8192  ;;  %s1517_s5 = scalar_lea.hbm %s2084_s4, 16384 }
 0x176   : > { %p1514_p10 = scmp.ne.s32.totalorder %s2024_s11, %s1513_s24  ;;  %p1518_p2 = scmp.lt.s32.totalorder %s2024_s11, %s2084_s4 }
 0x177   : > { %p1519_p12 = scmp.lt.s32.totalorder %s1517_s5, %s1513_s24 }
 0x178   : > { %p1515_p4 = pnand %p1514_p10, %p1664_p9 }
 0x179   : > { %p1520_p8 = por %p1519_p12, %p1518_p2 }
 0x17a   : > { %p1516_p13 = pneg %p1515_p4 }
 0x17c   : > { %p1521_p0 = pnand %p1520_p8, %p1516_p13 }
 0x17e   : > { %1524 = shalt.err (!%p1521_p0)
}
 0x17f   : > { %s1586_s9 = smov 256   ;;  %s1587_s27 = smov 16  }
 0x180   : > { %1404 = dma.vmem_to_hbm [thread:$0]  (%p1664_p9), %s2026_s10, 8192, %s2024_s11, %s1102_s12, %s1586_s9, %s1586_s9, %s1587_s27  }
 0x181 PF: > { %s1133_s18 = sand.u32 1, %s1559_s15   ;;  %p2090_p1 = scmp.ge.s32.totalorder %s1579_s20, 2 }
 0x182   : > { %s1134_s13 = scalar_lea.sflag [#allocation4], %s1133_s18 }
 0x183   : > { %p1411_p3 = pnand %p2090_p1, %p1671_p11 }
 0x185   : > { %p1412_p5 = pneg %p1411_p3 }
 0x187   : > { %1554 = dma.done.wait (%p1412_p5), %s1134_s13, 8192  }
 0x188   : > { %1556 = vsyncadd (%p1412_p5), %s1134_s13, 4294959104  ;;  %s20_s20 = sadd.s32 1, %s1579_s20   ;;  %s2091_s15 = smov %s1563_s16 }
 0x189   : > { %p17_p6 = scmp.ge.s32.totalorder %s20_s20, 4   ;;  %s2092_s16 = smov %s1567_s17 }
 0x18a   : > { %s2093_s17 = smov %s1669_s29  ;;  %s2094_s18 = smov %s1575_s19 }
 0x18b   : > { %s2095_s19 = smov %s2097_s23  ;;  %19 = sbr.rel (!%p17_p6) target bundleno = 6 (0x6), region = 90 }
 0x190   :  { %1139 = vsyncpa [#allocation3], 1 }
 0x191   :  { %1141 = vsyncpa [#allocation3 + $0x1], 1 }
 0x192   :  { %1142 = vsyncpa [#allocation4], 1 }
 0x193   :  { %1144 = vsyncpa [#allocation4 + $0x1], 1 }

</bundles_post_ra>
